<compile_context>
chip_gen: v7x
topology: tpu7x:2x2x1
jax: 0.10.0
libtpu: 0.0.40
codegen_flags: <defaults>
</compile_context>

<pallas_src>
import functools

import jax
import jax.numpy as jnp
import numpy as np
from jax.experimental import pallas as pl
from jax.experimental.pallas import tpu as pltpu


def _ssam_kernel(x_ref, coord_ref, out_ref):
    """Spatial soft-argmax over one row-tile of flattened feature maps.

    x_ref:     (TILE_R, H*W)  input dtype   logits (one row per feature map)
    coord_ref: (2, H*W)       float32       row 0 = xc, row 1 = yc (torch 'ij' flatten)
    out_ref:   (TILE_R, 2)    float32       cols = [x_mean, y_mean]
    """
    x = x_ref[...]                                       # native dtype, no f32 copy
    m = jnp.max(x, axis=-1, keepdims=True)               # (R, 1)   XLU
    e = jnp.exp((x - m).astype(jnp.float32))             # (R, HW)  EUP; only f32 temp
    xc = coord_ref[0:1, :]                               # (1, HW)
    yc = coord_ref[1:2, :]
    denom = jnp.sum(e, axis=-1, keepdims=True)           # (R, 1)  exact f32 reductions
    sx = jnp.sum(e * xc, axis=-1, keepdims=True)         # (R, 1)
    sy = jnp.sum(e * yc, axis=-1, keepdims=True)         # (R, 1)
    out_ref[:, 0:1] = sx / denom                         # exact f32 divide
    out_ref[:, 1:2] = sy / denom


def _round_up(v, m):
    return -(-v // m) * m


def _vmem_capacity_bytes():
    try:
        return int(pltpu.get_tpu_info().vmem_capacity_bytes)
    except Exception:
        return 64 * 1024 * 1024  # conservative fallback (v7x per-core VMEM)


def _choose_tiling(bc, hw, in_itemsize, vmem_cap):
    """Row tile sized to ~1/3 of this generation's VMEM; >=2 (even) blocks if possible."""
    if bc <= 8:
        return bc, 1  # single full-extent block (block dim == array dim is legal)
    tile_budget = vmem_cap // 3
    # Per-row bytes: 2x double-buffered native-dtype input tile + the f32 `e` temp.
    bytes_per_row = hw * (2 * in_itemsize + 4)
    tile_r = min(1024, max(8, tile_budget // max(bytes_per_row, 1)))
    tile_r = max(8, (tile_r // 8) * 8)
    tile_r = min(tile_r, _round_up(bc, 8))
    grid = pl.cdiv(bc, tile_r)
    # Megacore (v7x): prefer an even number of >= 2 'parallel' blocks.
    if grid == 1:
        grid = 2
    elif grid % 2:
        grid += 1
    tile_r = max(8, _round_up(pl.cdiv(bc, grid), 8))      # never exceeds the budget tile
    grid = pl.cdiv(bc, tile_r)
    return tile_r, grid


def spatial_soft_argmax(x, normalize=False):
    """Pallas implementation of SpatialSoftArgmax.forward.

    Args:
      x: (B, C, H, W) array (float32 or bfloat16).
      normalize: use [-1, 1] coordinates instead of pixel indices.
    Returns:
      (B, 2*C) float32, interleaved as [x0, y0, x1, y1, ...] per batch element
      (identical to torch.cat([x_mean, y_mean], dim=1).view(-1, c*2)).
    """
    assert x.ndim == 4, "Expecting a tensor of shape (B, C, H, W)."
    b, c, h, w = x.shape
    hw = h * w
    bc = b * c

    # --- coordinate rows (host-side NumPy constant, matches torch.meshgrid 'ij') ---
    if normalize:
        xs = np.linspace(-1.0, 1.0, w, dtype=np.float32)
        ys = np.linspace(-1.0, 1.0, h, dtype=np.float32)
    else:
        xs = np.arange(0, w, dtype=np.float32)
        ys = np.arange(0, h, dtype=np.float32)
    xc, yc = np.meshgrid(xs, ys, indexing="ij")           # each (w, h)
    coords = jnp.asarray(
        np.stack([xc.reshape(-1), yc.reshape(-1)], axis=0), dtype=jnp.float32
    )                                                      # (2, hw)

    # --- flatten: no pad, no dtype cast (kernel upcasts at the exp only) ---
    x_flat = x.reshape(bc, hw)
    vmem_cap = _vmem_capacity_bytes()
    tile_r, grid = _choose_tiling(bc, hw, x_flat.dtype.itemsize, vmem_cap)
    vmem_limit = int(
        min(96 * 1024 * 1024, max(vmem_cap - 24 * 1024 * 1024, 32 * 1024 * 1024))
    )

    out = pl.pallas_call(
        _ssam_kernel,
        out_shape=jax.ShapeDtypeStruct((bc, 2), jnp.float32),
        grid_spec=pltpu.PrefetchScalarGridSpec(
            num_scalar_prefetch=0,
            grid=(grid,),
            in_specs=[
                pl.BlockSpec((tile_r, hw), lambda i: (i, 0)),
                pl.BlockSpec((2, hw), lambda i: (0, 0)),   # resident coord rows
            ],
            out_specs=pl.BlockSpec((tile_r, 2), lambda i: (i, 0)),
        ),
        compiler_params=pltpu.CompilerParams(
            dimension_semantics=("parallel",),
            vmem_limit_bytes=vmem_limit,
        ),
    )(x_flat, coords)

    return out.reshape(b, c * 2)


def _reference(x, normalize=False):
    """Pure-JAX reference mirroring the PyTorch code line-by-line."""
    b, c, h, w = x.shape
    logits = x.reshape(-1, h * w).astype(jnp.float32)
    p = jax.nn.softmax(logits, axis=-1)
    if normalize:
        xs = jnp.linspace(-1.0, 1.0, w)
        ys = jnp.linspace(-1.0, 1.0, h)
    else:
        xs = jnp.arange(0, w, dtype=jnp.float32)
        ys = jnp.arange(0, h, dtype=jnp.float32)
    xc, yc = jnp.meshgrid(xs, ys, indexing="ij")
    x_mean = jnp.sum(p * xc.reshape(-1)[None, :], axis=1, keepdims=True)
    y_mean = jnp.sum(p * yc.reshape(-1)[None, :], axis=1, keepdims=True)
    return jnp.concatenate([x_mean, y_mean], axis=1).reshape(-1, c * 2)


if __name__ == "__main__":
    key = jax.random.PRNGKey(0)
    B, C, H, W = 2, 4, 16, 16
    x = jax.random.normal(key, (B, C, H, W), dtype=jnp.float32)

    for norm in (False, True):
        fn = jax.jit(functools.partial(spatial_soft_argmax, normalize=norm))
        out = fn(x)
        jax.block_until_ready(out)
        ref = _reference(x, normalize=norm)
        # Kernel is exact f32 (no approx reciprocal, no bf16 MXU truncation), so only
        # reduction-order / exp ulp differences remain.
        np.testing.assert_allclose(
            np.asarray(out), np.asarray(ref), rtol=1e-4, atol=1e-4
        )

    print("KERNEL_OK")
</pallas_src>

<mosaic_0001>
module attributes {stable_mosaic.version = 11 : i64} {
  func.func @_ssam_kernel(%arg0: i32, %arg1: memref<8x256xf32, #tpu.memory_space<vmem>>, %arg2: memref<2x256xf32, #tpu.memory_space<vmem>>, %arg3: memref<8x2xf32, #tpu.memory_space<vmem>>) attributes {dimension_semantics = [#tpu.dimension_semantics<parallel>], iteration_bounds = array<i64: 1>, scalar_prefetch = 0 : i64, scratch_operands = 0 : i64, tpu.core_type = #tpu.core_type<tc>, window_params = [{transform_indices = @transform_0, window_bounds = array<i64: 8, 256>}, {pipeline_mode = #tpu.pipeline_mode<synchronous>, transform_indices = @transform_1, window_bounds = array<i64: 2, 256>}, {transform_indices = @transform_2, window_bounds = array<i64: 8, 2>}]} {
    %c0 = arith.constant 0 : index
    %c0_0 = arith.constant 0 : index
    %0 = vector.load %arg1[%c0, %c0_0] : memref<8x256xf32, #tpu.memory_space<vmem>>, vector<8x256xf32>
    %cst = arith.constant dense<0xFF800000> : vector<8xf32>
    %1 = vector.multi_reduction <maximumf>, %0, %cst [1] : vector<8x256xf32> to vector<8xf32>
    %2 = vector.shape_cast %1 : vector<8xf32> to vector<8x1xf32>
    %3 = vector.broadcast %2 : vector<8x1xf32> to vector<8x256xf32>
    %4 = arith.subf %0, %3 : vector<8x256xf32>
    %5 = math.exp %4 : vector<8x256xf32>
    %c0_1 = arith.constant 0 : index
    %c0_2 = arith.constant 0 : index
    %6 = vector.load %arg2[%c0_1, %c0_2] : memref<2x256xf32, #tpu.memory_space<vmem>>, vector<1x256xf32>
    %c1 = arith.constant 1 : index
    %c0_3 = arith.constant 0 : index
    %7 = vector.load %arg2[%c1, %c0_3] : memref<2x256xf32, #tpu.memory_space<vmem>>, vector<1x256xf32>
    %cst_4 = arith.constant dense<0.000000e+00> : vector<8xf32>
    %8 = vector.multi_reduction <add>, %5, %cst_4 [1] : vector<8x256xf32> to vector<8xf32>
    %9 = vector.shape_cast %8 : vector<8xf32> to vector<8x1xf32>
    %10 = vector.broadcast %6 : vector<1x256xf32> to vector<8x256xf32>
    %11 = arith.mulf %5, %10 : vector<8x256xf32>
    %cst_5 = arith.constant dense<0.000000e+00> : vector<8xf32>
    %12 = vector.multi_reduction <add>, %11, %cst_5 [1] : vector<8x256xf32> to vector<8xf32>
    %13 = vector.shape_cast %12 : vector<8xf32> to vector<8x1xf32>
    %14 = vector.broadcast %7 : vector<1x256xf32> to vector<8x256xf32>
    %15 = arith.mulf %5, %14 : vector<8x256xf32>
    %cst_6 = arith.constant dense<0.000000e+00> : vector<8xf32>
    %16 = vector.multi_reduction <add>, %15, %cst_6 [1] : vector<8x256xf32> to vector<8xf32>
    %17 = vector.shape_cast %16 : vector<8xf32> to vector<8x1xf32>
    %18 = arith.divf %13, %9 : vector<8x1xf32>
    %c0_7 = arith.constant 0 : index
    %c0_8 = arith.constant 0 : index
    %19 = vector.load %arg3[%c0_7, %c0_8] : memref<8x2xf32, #tpu.memory_space<vmem>>, vector<8x1xf32>
    tpu.vector_store %arg3[%c0_7, %c0_8], %18 {strides = array<i32>} : memref<8x2xf32, #tpu.memory_space<vmem>>, vector<8x1xf32>,
    %20 = arith.divf %17, %9 : vector<8x1xf32>
    %c0_9 = arith.constant 0 : index
    %c1_10 = arith.constant 1 : index
    %21 = vector.load %arg3[%c0_9, %c1_10] : memref<8x2xf32, #tpu.memory_space<vmem>>, vector<8x1xf32>
    tpu.vector_store %arg3[%c0_9, %c1_10], %20 {strides = array<i32>} : memref<8x2xf32, #tpu.memory_space<vmem>>, vector<8x1xf32>,
    return
  }
  func.func @transform_0(%arg0: i32) -> (i32, i32) {
    %c0_i32 = arith.constant 0 : i32
    %c0_i32_0 = arith.constant 0 : i32
    return %arg0, %c0_i32 : i32, i32
  }
  func.func @transform_1(%arg0: i32) -> (i32, i32) {
    %c0_i32 = arith.constant 0 : i32
    %c0_i32_0 = arith.constant 0 : i32
    %c0_i32_1 = arith.constant 0 : i32
    return %c0_i32, %c0_i32_0 : i32, i32
  }
  func.func @transform_2(%arg0: i32) -> (i32, i32) {
    %c0_i32 = arith.constant 0 : i32
    %c0_i32_0 = arith.constant 0 : i32
    return %arg0, %c0_i32 : i32, i32
  }
}

</mosaic_0001>

<bundles_post_ra>
// kernel: spatial_soft_argmax.1
= control target key start
LH: loop header
LB: loop body
LE: loop exit
PB: predicated region body
PF: predicated region fallthrough
CT: control target
= control target key end

     0   :  { %v29_v4 = vlaneseq  ;;  %vm62_vm0 = vcmask 7168   ;;  %vm65_vm1 = vcmask 15368   ;;  %s111_s0 = inlined_call_operand.vmem [shape: f32[8,256], index: 0, kind: input, shape index: {}]   ;;  %s112_s1 = inlined_call_operand.vmem [shape: f32[2,256], index: 1, kind: input, shape index: {}]   ;;  %s113_s2 = inlined_call_operand.vmem [shape: f32[8,2], index: 2, kind: output, shape index: {}]  }
   0x1   :  { %v11_v0 = vld [vmem:[%s111_s0] sm:$0xff]  ;;  %v12_v1 = vld [vmem:[%s111_s0 + $0x8] sm:$0xff] }
   0x2   :  { %v13_v2 = vmax.f32 %v11_v0, %v12_v1  ;;  %v30_v9 = vshrl.u32 %v29_v4, 7  ;;  %v22_v11 = vld [vmem:[%s112_s1] ss:$2 sm:$0x3] }
   0x3   :  { %v71_v14 = vld [vmem:[%s112_s1 + $0x1] ss:$2 sm:$0x3] }
   0x4   :  { %14 = vmax.xlane.f32.xlu0 %v13_v2  ;;  %v31_v10 = vsub.s32 0, %v30_v9  ;;  %v35_v12 = vsub.s32 1, %v30_v9 }
   0x6   :  { %v32_v13 = vrot.slane %v22_v11, %v31_v10  ;;  %v36_v15 = vrot.slane %v22_v11, %v35_v12  ;;  %v48_v17 = vrot.slane %v71_v14, %v31_v10  ;;  %v52_v18 = vrot.slane %v71_v14, %v35_v12 }
  0x91   :  { %v15_v3 = vpop.xlane.xlu0 %14 }
  0x92   :  { %v16_v5 = vsub.f32 %v11_v0, %v15_v3  ;;  %v17_v6 = vsub.f32 %v12_v1, %v15_v3 }
  0x94   :  { %v18_v7 = vmul.f32 1.442695, %v16_v5  ;;  %v20_v8 = vmul.f32 1.442695, %v17_v6 }
  0x96   :  { %72 = vpow2.f32 %v18_v7 }
  0x97   :  { %74 = vpow2.f32 %v20_v8 }
  0xa0   :  { %v73_v16 = vpop.eup %72 }
  0xa1   :  { %v75_v19 = vpop.eup %74  ;;  %v39_v20 = vmul.f32 %v73_v16, %v32_v13  ;;  %v55_v24 = vmul.f32 %v73_v16, %v48_v17 }
  0xa2   :  { %v25_v21 = vadd.f32 %v75_v19, %v73_v16  ;;  %v40_v22 = vmul.f32 %v75_v19, %v36_v15  ;;  %v56_v25 = vmul.f32 %v75_v19, %v52_v18 }
  0xa4   :  { %26 = vadd.xlane.f32.xlu0 %v25_v21  ;;  %v41_v23 = vadd.f32 %v40_v22, %v39_v20  ;;  %v57_v26 = vadd.f32 %v56_v25, %v55_v24 }
  0xa6   :  { %42 = vadd.xlane.f32.xlu1 %v41_v23 }
  0xaa   :  { %58 = vadd.xlane.f32.xlu1 %v57_v26 }
 0x131   :  { %v27_v27 = vpop.xlane.xlu0 %26 }
 0x132   :  { %76 = vrcp.f32 %v27_v27 }
 0x133   :  { %v43_v28 = vpop.xlane.xlu1 %42 }
 0x137   :  { %v59_v30 = vpop.xlane.xlu1 %58 }
 0x13c   :  { %v77_v29 = vpop.eup %76 }
 0x13d   :  { %v61_v31 = vmul.f32 %v77_v29, %v43_v28  ;;  %v64_v32 = vmul.f32 %v77_v29, %v59_v30 }
 0x13f   :  { %63 = vst.msk [vmem:[%s113_s2] sm:$0xff] %vm62_vm0, %v61_v31 }
 0x140   :  { %66 = vst.msk [vmem:[%s113_s2] sm:$0xff] %vm65_vm1, %v64_v32 }

</bundles_post_ra>
